<compile_context>
chip_gen: v7x
topology: tpu7x:2x2x1
jax: 0.10.0
libtpu: 0.0.40
codegen_flags: <defaults>
</compile_context>

<pallas_src>
import jax
import jax.numpy as jnp
from jax.experimental import pallas as pl
from jax.experimental.pallas import tpu as pltpu


def _round_up(x, m):
    return ((x + m - 1) // m) * m


def mlp_kernel(x_ref, w0_ref, b0_ref, w1_ref, b1_ref, w2_ref, b2_ref, o_ref):
    # Fused 3-layer MLP for one batch tile. Weights (bf16) resident in VMEM.
    x = x_ref[...].astype(jnp.bfloat16)              # in-kernel cast (VPU, hidden under MXU)

    # layer 0: input -> hidden, ReLU (f32 accumulate, f32 bias/ReLU)
    h = jnp.dot(x, w0_ref[...], preferred_element_type=jnp.float32)
    h = jnp.maximum(h + b0_ref[...], 0.0)

    # layer 1: hidden -> hidden, ReLU   (layer_num - 2 == 1 hidden layer)
    h = jnp.dot(h.astype(jnp.bfloat16), w1_ref[...],
                preferred_element_type=jnp.float32)
    h = jnp.maximum(h + b1_ref[...], 0.0)

    # output layer: hidden -> output (no activation)
    y = jnp.dot(h.astype(jnp.bfloat16), w2_ref[...],
                preferred_element_type=jnp.float32)
    o_ref[...] = (y + b2_ref[...]).astype(o_ref.dtype)


def prepare_params(params):
    """One-time (init / load-time) padding + bf16 cast of the weights.

    Weights keep K (= in_features of layer 0) unpadded; all other feature dims
    are padded to a multiple of 128 so every matmul N is lane-dense.  Padding
    is numerically exact: padded hidden units get zero weights and zero bias
    -> ReLU -> 0, and their (zero) weight rows contribute nothing downstream;
    padded output columns are sliced off.
    """
    w0, b0 = params["w0"], params["b0"]
    w1, b1 = params["w1"], params["b1"]
    w2, b2 = params["w2"], params["b2"]

    d_in, d_hid = w0.shape
    d_out = w2.shape[1]
    d_hid_p = _round_up(d_hid, 128)
    d_out_p = _round_up(d_out, 128)

    def pad2(a, r, c):
        return jnp.pad(a, ((0, r - a.shape[0]), (0, c - a.shape[1])))

    prepared = {
        "w0": pad2(w0, d_in, d_hid_p).astype(jnp.bfloat16),
        "w1": pad2(w1, d_hid_p, d_hid_p).astype(jnp.bfloat16),
        "w2": pad2(w2, d_hid_p, d_out_p).astype(jnp.bfloat16),
        "b0": pad2(b0, 1, d_hid_p).astype(jnp.float32),
        "b1": pad2(b1, 1, d_hid_p).astype(jnp.float32),
        "b2": pad2(b2, 1, d_out_p).astype(jnp.float32),
        "d_in": d_in, "d_hid_p": d_hid_p, "d_out": d_out, "d_out_p": d_out_p,
    }
    return jax.tree_util.tree_map(
        lambda a: jax.device_put(a) if isinstance(a, jnp.ndarray) else a, prepared)


def _vmem_cap_bytes():
    try:
        return int(pltpu.get_tpu_info().vmem_capacity_bytes)
    except Exception:
        return 64 << 20  # conservative fallback (v7x per-TC VMEM)


def mlp_forward(x, prepared, *, batch_tile=512):
    """x: (B, d_in) f32.  prepared: output of prepare_params()."""
    B, d_in = x.shape
    assert d_in == prepared["d_in"]
    d_hid_p = prepared["d_hid_p"]
    d_out = prepared["d_out"]
    d_out_p = prepared["d_out_p"]

    # Batch tiling: balance tile size against B so tail padding stays < 8 rows;
    # split small batches into >= 2 tiles so both v7x TensorCores get work.
    n_tiles = max(1, -(-B // batch_tile))      # cdiv(B, batch_tile)
    if n_tiles == 1 and B >= 16:
        n_tiles = 2
    bt = _round_up(-(-B // n_tiles), 8)        # round_up(cdiv(B, n_tiles), 8)
    B_pad = _round_up(B, bt)
    grid = (B_pad // bt,)

    # Only batch rows are padded (no column pad, no wrapper-side cast of x).
    x_p = x if B_pad == B else jnp.pad(x, ((0, B_pad - B), (0, 0)))

    # VMEM budget:
    #   weights single-buffered bf16, biases f32,
    #   x / out tiles double-buffered,
    #   in-kernel intermediates: bf16 x copy, 2x f32 h, 2x bf16 recast.
    weight_bytes = 2 * (d_in * d_hid_p + d_hid_p * d_hid_p + d_hid_p * d_out_p)
    bias_bytes = 4 * (2 * d_hid_p + d_out_p)
    act_io_bytes = 2 * (bt * d_in * 4 + bt * d_out_p * 4)
    interm_bytes = bt * d_in * 2 + 2 * bt * d_hid_p * 4 + 2 * bt * d_hid_p * 2
    vmem_budget = weight_bytes + bias_bytes + act_io_bytes + interm_bytes + (4 << 20)
    # Generation-specific cap with ~25% headroom for Mosaic internal scratch
    # (~48 MiB on v7x's 64 MiB VMEM, ~96 MiB on v5e/v6e's 128 MiB).
    vmem_cap = int(_vmem_cap_bytes() * 0.75)
    vmem_limit = int(min(max(vmem_budget, 32 << 20), vmem_cap))

    # Constant-index (grid-invariant) blocks: single-buffered, VMEM-resident.
    def resident(shape):
        return pl.BlockSpec(shape, lambda i: (0, 0), pipeline_mode=pl.Buffered(1))

    out_p = pl.pallas_call(
        mlp_kernel,
        out_shape=jax.ShapeDtypeStruct((B_pad, d_out_p), jnp.float32),
        grid_spec=pltpu.PrefetchScalarGridSpec(
            num_scalar_prefetch=0,
            grid=grid,
            in_specs=[
                # x tile: last dim equals the full array dim (allowed by the
                # (8,128) rule), so K stays unpadded.
                pl.BlockSpec((bt, d_in), lambda i: (i, 0)),
                resident((d_in, d_hid_p)),     # w0
                resident((1, d_hid_p)),        # b0
                resident((d_hid_p, d_hid_p)),  # w1
                resident((1, d_hid_p)),        # b1
                resident((d_hid_p, d_out_p)),  # w2
                resident((1, d_out_p)),        # b2
            ],
            out_specs=pl.BlockSpec((bt, d_out_p), lambda i: (i, 0)),
        ),
        compiler_params=pltpu.CompilerParams(
            # TODO(synk): use pltpu.CORE_PARALLEL on v7x for guaranteed 2-TC
            # sharding; "parallel" kept here for portability across v5e/v6e.
            dimension_semantics=("parallel",),
            vmem_limit_bytes=vmem_limit,
        ),
    )(x_p, prepared["w0"], prepared["b0"], prepared["w1"], prepared["b1"],
      prepared["w2"], prepared["b2"])

    # Strip batch / output-lane padding.
    return out_p[:B, :d_out]


def init_params(key, d_in, d_hid, d_out):
    """Deterministic PyTorch-style uniform(-1/sqrt(fan_in), 1/sqrt(fan_in)) init."""
    def linear(k, fan_in, fan_out):
        kw, kb = jax.random.split(k)
        bound = 1.0 / jnp.sqrt(fan_in)
        w = jax.random.uniform(kw, (fan_in, fan_out), jnp.float32, -bound, bound)
        b = jax.random.uniform(kb, (1, fan_out), jnp.float32, -bound, bound)
        return w, b

    k0, k1, k2 = jax.random.split(key, 3)
    w0, b0 = linear(k0, d_in, d_hid)
    w1, b1 = linear(k1, d_hid, d_hid)
    w2, b2 = linear(k2, d_hid, d_out)
    return {"w0": w0, "b0": b0, "w1": w1, "b1": b1, "w2": w2, "b2": b2}


def reference_forward(x, p):
    h = jnp.maximum(x @ p["w0"] + p["b0"], 0.0)
    h = jnp.maximum(h @ p["w1"] + p["b1"], 0.0)
    return h @ p["w2"] + p["b2"]


if __name__ == "__main__":
    # Small shapes consistent with the module (input_size=784, hidden=800,
    # output=10 in the original; scaled down here). Hidden deliberately not a
    # multiple of 128 to exercise the lane-padding path.
    batch, d_in, d_hid, d_out = 16, 96, 144, 10

    key = jax.random.PRNGKey(0)
    kx, kp = jax.random.split(key)
    x = jax.random.normal(kx, (batch, d_in), jnp.float32)
    params = init_params(kp, d_in, d_hid, d_out)

    prepared = prepare_params(params)   # one-time pad + bf16 cast of weights
    out = mlp_forward(x, prepared)
    out = jax.block_until_ready(out)

    ref = reference_forward(x, params)
    assert out.shape == (batch, d_out)
    # bf16 matmul operands vs f32 reference -> loose tolerance
    assert jnp.allclose(out, ref, atol=5e-2, rtol=5e-2), "mismatch vs reference"

    print("KERNEL_OK")
</pallas_src>

<mosaic_0001>
module attributes {stable_mosaic.version = 11 : i64} {
  func.func @mlp_kernel(%arg0: i32, %arg1: memref<8x96xf32, #tpu.memory_space<vmem>>, %arg2: memref<96x256xbf16, #tpu.memory_space<vmem>>, %arg3: memref<1x256xf32, #tpu.memory_space<vmem>>, %arg4: memref<256x256xbf16, #tpu.memory_space<vmem>>, %arg5: memref<1x256xf32, #tpu.memory_space<vmem>>, %arg6: memref<256x128xbf16, #tpu.memory_space<vmem>>, %arg7: memref<1x128xf32, #tpu.memory_space<vmem>>, %arg8: memref<8x128xf32, #tpu.memory_space<vmem>>) attributes {dimension_semantics = [#tpu.dimension_semantics<parallel>], iteration_bounds = array<i64: 2>, scalar_prefetch = 0 : i64, scratch_operands = 0 : i64, tpu.core_type = #tpu.core_type<tc>, window_params = [{transform_indices = @transform_0, window_bounds = array<i64: 8, 96>}, {pipeline_mode = #tpu.pipeline_mode<synchronous>, transform_indices = @transform_1, window_bounds = array<i64: 96, 256>}, {pipeline_mode = #tpu.pipeline_mode<synchronous>, transform_indices = @transform_2, window_bounds = array<i64: 1, 256>}, {pipeline_mode = #tpu.pipeline_mode<synchronous>, transform_indices = @transform_3, window_bounds = array<i64: 256, 256>}, {pipeline_mode = #tpu.pipeline_mode<synchronous>, transform_indices = @transform_4, window_bounds = array<i64: 1, 256>}, {pipeline_mode = #tpu.pipeline_mode<synchronous>, transform_indices = @transform_5, window_bounds = array<i64: 256, 128>}, {pipeline_mode = #tpu.pipeline_mode<synchronous>, transform_indices = @transform_6, window_bounds = array<i64: 1, 128>}, {transform_indices = @transform_7, window_bounds = array<i64: 8, 128>}]} {
    %c0 = arith.constant 0 : index
    %c0_0 = arith.constant 0 : index
    %0 = vector.load %arg1[%c0, %c0_0] : memref<8x96xf32, #tpu.memory_space<vmem>>, vector<8x96xf32>
    %1 = arith.truncf %0 : vector<8x96xf32> to vector<8x96xbf16>
    %c0_1 = arith.constant 0 : index
    %c0_2 = arith.constant 0 : index
    %2 = vector.load %arg2[%c0_1, %c0_2] : memref<96x256xbf16, #tpu.memory_space<vmem>>, vector<96x256xbf16>
    %cst = arith.constant dense<0.000000e+00> : vector<8x256xf32>
    %3 = tpu.matmul %1, %2, %cst {dimension_numbers = #tpu.dot_dimension_numbers<[1], [0], [0], [1], [0, 0, 1, 1], [], []>} : vector<8x96xbf16>, vector<96x256xbf16>, vector<8x256xf32> -> vector<8x256xf32>
    %c0_3 = arith.constant 0 : index
    %c0_4 = arith.constant 0 : index
    %4 = vector.load %arg3[%c0_3, %c0_4] : memref<1x256xf32, #tpu.memory_space<vmem>>, vector<1x256xf32>
    %5 = vector.broadcast %4 : vector<1x256xf32> to vector<8x256xf32>
    %6 = arith.addf %3, %5 : vector<8x256xf32>
    %cst_5 = arith.constant 0.000000e+00 : f32
    %7 = vector.broadcast %cst_5 : f32 to vector<8x256xf32>
    %8 = arith.maximumf %6, %7 : vector<8x256xf32>
    %9 = arith.truncf %8 : vector<8x256xf32> to vector<8x256xbf16>
    %c0_6 = arith.constant 0 : index
    %c0_7 = arith.constant 0 : index
    %10 = vector.load %arg4[%c0_6, %c0_7] : memref<256x256xbf16, #tpu.memory_space<vmem>>, vector<256x256xbf16>
    %cst_8 = arith.constant dense<0.000000e+00> : vector<8x256xf32>
    %11 = tpu.matmul %9, %10, %cst_8 {dimension_numbers = #tpu.dot_dimension_numbers<[1], [0], [0], [1], [0, 0, 1, 1], [], []>} : vector<8x256xbf16>, vector<256x256xbf16>, vector<8x256xf32> -> vector<8x256xf32>
    %c0_9 = arith.constant 0 : index
    %c0_10 = arith.constant 0 : index
    %12 = vector.load %arg5[%c0_9, %c0_10] : memref<1x256xf32, #tpu.memory_space<vmem>>, vector<1x256xf32>
    %13 = vector.broadcast %12 : vector<1x256xf32> to vector<8x256xf32>
    %14 = arith.addf %11, %13 : vector<8x256xf32>
    %cst_11 = arith.constant 0.000000e+00 : f32
    %15 = vector.broadcast %cst_11 : f32 to vector<8x256xf32>
    %16 = arith.maximumf %14, %15 : vector<8x256xf32>
    %17 = arith.truncf %16 : vector<8x256xf32> to vector<8x256xbf16>
    %c0_12 = arith.constant 0 : index
    %c0_13 = arith.constant 0 : index
    %18 = vector.load %arg6[%c0_12, %c0_13] : memref<256x128xbf16, #tpu.memory_space<vmem>>, vector<256x128xbf16>
    %cst_14 = arith.constant dense<0.000000e+00> : vector<8x128xf32>
    %19 = tpu.matmul %17, %18, %cst_14 {dimension_numbers = #tpu.dot_dimension_numbers<[1], [0], [0], [1], [0, 0, 1, 1], [], []>} : vector<8x256xbf16>, vector<256x128xbf16>, vector<8x128xf32> -> vector<8x128xf32>
    %c0_15 = arith.constant 0 : index
    %c0_16 = arith.constant 0 : index
    %20 = vector.load %arg7[%c0_15, %c0_16] : memref<1x128xf32, #tpu.memory_space<vmem>>, vector<1x128xf32>
    %21 = vector.broadcast %20 : vector<1x128xf32> to vector<8x128xf32>
    %22 = arith.addf %19, %21 : vector<8x128xf32>
    %c0_17 = arith.constant 0 : index
    %c0_18 = arith.constant 0 : index
    %23 = vector.load %arg8[%c0_17, %c0_18] : memref<8x128xf32, #tpu.memory_space<vmem>>, vector<8x128xf32>
    tpu.vector_store %arg8[%c0_17, %c0_18], %22 {strides = array<i32>} : memref<8x128xf32, #tpu.memory_space<vmem>>, vector<8x128xf32>,
    return
  }
  func.func @transform_0(%arg0: i32) -> (i32, i32) {
    %c0_i32 = arith.constant 0 : i32
    %c0_i32_0 = arith.constant 0 : i32
    return %arg0, %c0_i32 : i32, i32
  }
  func.func @transform_1(%arg0: i32) -> (i32, i32) {
    %c0_i32 = arith.constant 0 : i32
    %c0_i32_0 = arith.constant 0 : i32
    %c0_i32_1 = arith.constant 0 : i32
    return %c0_i32, %c0_i32_0 : i32, i32
  }
  func.func @transform_2(%arg0: i32) -> (i32, i32) {
    %c0_i32 = arith.constant 0 : i32
    %c0_i32_0 = arith.constant 0 : i32
    %c0_i32_1 = arith.constant 0 : i32
    return %c0_i32, %c0_i32_0 : i32, i32
  }
  func.func @transform_3(%arg0: i32) -> (i32, i32) {
    %c0_i32 = arith.constant 0 : i32
    %c0_i32_0 = arith.constant 0 : i32
    %c0_i32_1 = arith.constant 0 : i32
    return %c0_i32, %c0_i32_0 : i32, i32
  }
  func.func @transform_4(%arg0: i32) -> (i32, i32) {
    %c0_i32 = arith.constant 0 : i32
    %c0_i32_0 = arith.constant 0 : i32
    %c0_i32_1 = arith.constant 0 : i32
    return %c0_i32, %c0_i32_0 : i32, i32
  }
  func.func @transform_5(%arg0: i32) -> (i32, i32) {
    %c0_i32 = arith.constant 0 : i32
    %c0_i32_0 = arith.constant 0 : i32
    %c0_i32_1 = arith.constant 0 : i32
    return %c0_i32, %c0_i32_0 : i32, i32
  }
  func.func @transform_6(%arg0: i32) -> (i32, i32) {
    %c0_i32 = arith.constant 0 : i32
    %c0_i32_0 = arith.constant 0 : i32
    %c0_i32_1 = arith.constant 0 : i32
    return %c0_i32, %c0_i32_0 : i32, i32
  }
  func.func @transform_7(%arg0: i32) -> (i32, i32) {
    %c0_i32 = arith.constant 0 : i32
    %c0_i32_0 = arith.constant 0 : i32
    return %arg0, %c0_i32 : i32, i32
  }
}

</mosaic_0001>

<bundles_post_ra>
// kernel: tpu_custom_call.1
= control target key start
LH: loop header
LB: loop body
LE: loop exit
PB: predicated region body
PF: predicated region fallthrough
CT: control target
= control target key end

     0   :  { %12 = vsyncpa [#allocation3], 0  ;;  %s1788_s0 = inlined_call_operand.hbm [shape: f32[16,96], index: 0, kind: input, shape index: {}]   ;;  %s1789_s1 = inlined_call_operand.hbm [shape: bf16[96,256], index: 1, kind: input, shape index: {}]   ;;  %s1790_s2 = inlined_call_operand.vmem [shape: f32[1,256], index: 2, kind: input, shape index: {}]   ;;  %s1791_s3 = inlined_call_operand.hbm [shape: bf16[256,256], index: 3, kind: input, shape index: {}]   ;;  %s1792_s4 = inlined_call_operand.vmem [shape: f32[1,256], index: 4, kind: input, shape index: {}]   ;;  %s1793_s5 = inlined_call_operand.hbm [shape: bf16[256,128], index: 5, kind: input, shape index: {}]   ;;  %s1794_s6 = inlined_call_operand.vmem [shape: f32[1,128], index: 6, kind: input, shape index: {}]   ;;  %s1795_s7 = inlined_call_operand.hbm [shape: f32[16,128], index: 7, kind: output, shape index: {}]  }
   0x1   :  { %14 = vsyncpa [#allocation3 + $0x1], 0 }
   0x2   :  { %15 = vsyncpa [#allocation6], 0 }
   0x3   :  { %16 = vsyncpa [#allocation9], 0 }
   0x4   :  { %17 = vsyncpa [#allocation4], 0 }
   0x5   :  { %19 = vsyncpa [#allocation4 + $0x1], 0  ;;  %s1518_s24 = smov 0   ;;  %s1520_s25 = smov 0  }
   0x6   :  { %s1522_s26 = smov 0   ;;  %s1524_s27 = smov 0  }
   0x7 LB: > { %s1539_s28 = sadd.s32 4294967295, %s1466_s27   ;;  %s1012_s29 = sadd.s32 4294967294, %s1466_s27   ;;  %s1466_s27 = sphi %s1524_s27, %s1821_s27   ;;  %s1462_s26 = sphi %s1522_s26, %s1820_s26   ;;  %s1458_s25 = sphi %s1520_s25, %s1819_s25   ;;  %s1454_s24 = sphi %s1518_s24, %s1818_s24  }
   0x8   : > { %p45_p0 = scmp.ne.s32.totalorder %s1458_s25, %s1454_s24  ;;  %p1796_p1 = scmp.eq.s32.totalorder %s1539_s28, 0 }
   0x9   : > { %p201_p3 = scmp.eq.s32.totalorder %s1012_s29, 1  ;;  %p1013_p5 = scmp.ge.s32.totalorder %s1466_s27, 1 }
   0xa   : > { %p1548_p4 = por %p1796_p1, %p45_p0  ;;  %p208_p7 = scmp.lt.s32.totalorder %s1466_s27, 3 }
   0xb   : > { %p1553_p6 = por %p201_p3, %p45_p0  ;;  %s1468_s10 = smov [#allocation5]  }
   0xc   : > { %s1800_s30 = scalar_select %p1548_p4, 1, 0 }
   0xd   : > { %s1801_s8 = scalar_select %p1553_p6, 1, 0 }
   0xe   : > { %p1558_p8 = pnand %p1013_p5, %p208_p7  ;;  %s220_s11 = sshll.u32 %s1468_s10, 4  ;;  %s1562_s11 = int_to_ptr.vmem [resolvable:$true] %s220_s11 }
   0xf   : > { %1802 = sst [smem:[#allocation15_spill]] %s1801_s8  ;;  %s1469_s13 = smov [#allocation7]  }
  0x10   : > { %s1803_s9 = scalar_select %p1558_p8, 1, 0 }
  0x11   : > { %p1130_p9 = pneg %p1558_p8  ;;  %s236_s14 = sshll.u32 %s1469_s13, 4  ;;  %s1573_s14 = int_to_ptr.vmem [resolvable:$true] %s236_s14 }
  0x12   : > { %s1470_s15 = smov [#allocation8]   ;;  %s1278_s19 = scalar_lea.hbm %s1789_s1, 1536 }
  0x13   : > { %p1569_p11 = pnand %p1130_p9, %p1796_p1  ;;  %s1575_s16 = sshll.u32 %s1470_s15, 4  ;;  %s253_s16 = int_to_ptr.vmem [resolvable:$true] %s1575_s16 }
  0x14   : > { %p1279_p12 = scmp.ne.s32.totalorder %s1789_s1, %s1278_s19  ;;  %p1285_p5 = scmp.lt.u32.totalorder %s1278_s19, %s1789_s1 }
  0x15   : > { %p1585_p13 = pneg %p1569_p11 }
  0x17   : > { %p1281_p0 = pnand %p1585_p13, %p1279_p12 }
  0x19   : > { %p1282_p3 = pneg %p1281_p0 }
  0x1b   : > { %p1287_p7 = pnand %p1285_p5, %p1282_p3 }
  0x1d   : > { %1290 = shalt.err (!%p1287_p7)
}
  0x1e   : > { %s1291_s10 = scalar_lea.vmem %s1562_s11, 1536  ;;  %p1299_p2 = scmp.lt.s32.totalorder %s1562_s11, %s1562_s11 }
  0x1f   : > { %p1292_p9 = scmp.ne.s32.totalorder %s1562_s11, %s1291_s10  ;;  %p1300_p6 = scmp.lt.s32.totalorder %s1291_s10, %s1291_s10 }
  0x21   : > { %p1294_p10 = pnand %p1292_p9, %p1585_p13  ;;  %p1301_p12 = por %p1300_p6, %p1299_p2 }
  0x23   : > { %p1295_p1 = pneg %p1294_p10 }
  0x25   : > { %p1302_p0 = pnand %p1301_p12, %p1295_p1 }
  0x27   : > { %1305 = shalt.err (!%p1302_p0)
}
  0x28   : > { %s1471_s13 = smov 128   ;;  %s1472_s15 = smov 8  }
  0x29   : > { %1133 = dma.hbm_to_vmem [thread:$0]  (!%p1569_p11), %s1789_s1, 1536, %s1562_s11, [#allocation6], %s1471_s13, %s1471_s13, %s1472_s15  }
  0x2a   : > { %s1306_s21 = scalar_lea.hbm %s1791_s3, 4096 }
  0x2b   : > { %p1307_p2 = scmp.ne.s32.totalorder %s1791_s3, %s1306_s21  ;;  %p1313_p10 = scmp.lt.u32.totalorder %s1306_s21, %s1791_s3 }
  0x2d   : > { %p1309_p1 = pnand %p1307_p2, %p1585_p13 }
  0x2f   : > { %p1310_p6 = pneg %p1309_p1 }
  0x31   : > { %p1315_p3 = pnand %p1313_p10, %p1310_p6 }
  0x33   : > { %1318 = shalt.err (!%p1315_p3)
}
  0x34   : > { %s1319_s11 = scalar_lea.vmem %s1573_s14, 4096  ;;  %p1327_p12 = scmp.lt.s32.totalorder %s1573_s14, %s1573_s14 }
  0x35   : > { %p1320_p5 = scmp.ne.s32.totalorder %s1573_s14, %s1319_s11  ;;  %p1328_p0 = scmp.lt.s32.totalorder %s1319_s11, %s1319_s11 }
  0x37   : > { %p1322_p7 = pnand %p1320_p5, %p1585_p13  ;;  %p1329_p2 = por %p1328_p0, %p1327_p12 }
  0x39   : > { %p1323_p9 = pneg %p1322_p7 }
  0x3b   : > { %p1330_p1 = pnand %p1329_p2, %p1323_p9 }
  0x3d   : > { %1333 = shalt.err (!%p1330_p1)
}
  0x3e   : > { %1136 = dma.hbm_to_vmem [thread:$0]  (!%p1569_p11), %s1791_s3, 4096, %s1573_s14, [#allocation6], %s1471_s13, %s1471_s13, %s1472_s15  }
  0x3f   : > { %s1334_s20 = scalar_lea.hbm %s1793_s5, 2048 }
  0x40   : > { %p1335_p6 = scmp.ne.s32.totalorder %s1793_s5, %s1334_s20  ;;  %p1341_p5 = scmp.lt.u32.totalorder %s1334_s20, %s1793_s5 }
  0x42   : > { %p1337_p10 = pnand %p1335_p6, %p1585_p13 }
  0x44   : > { %p1338_p3 = pneg %p1337_p10 }
  0x46   : > { %p1343_p7 = pnand %p1341_p5, %p1338_p3 }
  0x48   : > { %1346 = shalt.err (!%p1343_p7)
}
  0x49   : > { %s1347_s11 = scalar_lea.vmem %s253_s16, 2048  ;;  %p1355_p2 = scmp.lt.s32.totalorder %s253_s16, %s253_s16 }
  0x4a   : > { %p1348_p9 = scmp.ne.s32.totalorder %s253_s16, %s1347_s11  ;;  %p1356_p1 = scmp.lt.s32.totalorder %s1347_s11, %s1347_s11 }
  0x4c   : > { %p1350_p12 = pnand %p1348_p9, %p1585_p13  ;;  %p1357_p4 = por %p1356_p1, %p1355_p2 }
  0x4e   : > { %p1351_p0 = pneg %p1350_p12 }
  0x50   : > { %p1358_p8 = pnand %p1357_p4, %p1351_p0 }
  0x52   : > { %1361 = shalt.err (!%p1358_p8)
}
  0x53   : > { %s1473_s14 = smov 64   ;;  %s1474_s22 = smov 4  }
  0x54   : > { %1139 = dma.hbm_to_vmem [thread:$0]  (!%p1569_p11), %s1793_s5, 2048, %s253_s16, [#allocation9], %s1473_s14, %s1473_s14, %s1474_s22  }
  0x55   : > { %s1649_s8 = sadd.s32 1, %s1466_s27   ;;  %s32_s18 = sadd.s32 1, %s1462_s26 }
  0x56   : > { %s29_s17 = ssub.s32 %s1466_s27, %s1649_s8  ;;  %p39_p8 = scmp.ne.s32.totalorder %s1462_s26, %s1458_s25 }
  0x57   : > { %p30_p4 = scmp.eq.s32.totalorder %s29_s17, 0  ;;  %p40_p13 = scmp.eq.s32.totalorder %s1466_s27, 0 }
  0x58   : > { %p1151_p6 = scmp.lt.s32.totalorder %s1466_s27, 2  ;;  %p1806_p3 = scmp.eq.s32.totalorder %s1539_s28, 1 }
  0x59   : > { %s1659_s19 = scalar_select %p30_p4, %s1462_s26, %s32_s18  }
  0x5a   : > { %p41_p10 = por %p40_p13, %p39_p8  ;;  %p1663_p5 = por %p1806_p3, %p39_p8 }
  0x5b   : > { %s269_s12 = sand.u32 1, %s1462_s26   ;;  %s1019_s21 = sshll.u32 %s1466_s27, 7 }
  0x5c   : > { %s1018_s16 = sshll.u32 %s269_s12, 3  ;;  %s1672_s10 = scalar_lea.hbm %s1788_s0, %s1019_s21 }
  0x5d   : > { %s273_s11 = scalar_lea.vmem [#allocation2], %s1018_s16  ;;  %p1674_p11 = pnand %p1151_p6, %p41_p10 }
  0x5e   : > { %s280_s14 = sshll.u32 %s273_s11, 4  ;;  %s270_s13 = scalar_lea.sflag [#allocation3], %s269_s12  ;;  %s1678_s14 = int_to_ptr.vmem [resolvable:$true] %s280_s14 }
  0x5f   : > { %s1362_s15 = scalar_lea.hbm %s1672_s10, 128  ;;  %p1364_p9 = pneg %p1674_p11 }
  0x60   : > { %p1363_p7 = scmp.ne.s32.totalorder %s1672_s10, %s1362_s15  ;;  %s1367_s21 = scalar_lea.hbm %s1788_s0, 256 }
  0x61   : > { %p1368_p2 = scmp.lt.u32.totalorder %s1672_s10, %s1788_s0  ;;  %p1369_p1 = scmp.lt.u32.totalorder %s1367_s21, %s1362_s15 }
  0x62   : > { %p1365_p12 = pnand %p1364_p9, %p1363_p7  ;;  %p1371_p8 = scmp.lt.u32.totalorder %s1362_s15, %s1672_s10 }
  0x63   : > { %p1370_p4 = por %p1369_p1, %p1368_p2 }
  0x64   : > { %p1366_p0 = pneg %p1365_p12 }
  0x65   : > { %p1372_p13 = por %p1371_p8, %p1370_p4 }
  0x67   : > { %p1373_p6 = pnand %p1372_p13, %p1366_p0 }
  0x69   : > { %1376 = shalt.err (!%p1373_p6)
}
  0x6a   : > { %s1377_s12 = scalar_lea.vmem %s1678_s14, 128  ;;  %s1475_s29 = smov [#allocation2]  }
  0x6b   : > { %p1378_p10 = scmp.ne.s32.totalorder %s1678_s14, %s1377_s12  ;;  %s1382_s11 = sshll.u32 %s1475_s29, 4  ;;  %s1383_s11 = int_to_ptr.vmem [resolvable:$false] %s1382_s11 }
  0x6c   : > { %s1384_s17 = scalar_lea.vmem %s1383_s11, 256  ;;  %p1385_p12 = scmp.lt.s32.totalorder %s1678_s14, %s1383_s11 }
  0x6d   : > { %p1380_p3 = pnand %p1378_p10, %p1364_p9  ;;  %p1386_p2 = scmp.lt.s32.totalorder %s1384_s17, %s1377_s12 }
  0x6f   : > { %p1381_p7 = pneg %p1380_p3  ;;  %p1387_p1 = por %p1386_p2, %p1385_p12 }
  0x71   : > { %p1388_p4 = pnand %p1387_p1, %p1381_p7 }
  0x73   : > { %1391 = shalt.err (!%p1388_p4)
}
  0x74   : > { %1143 = dma.hbm_to_vmem [thread:$0]  (!%p1674_p11), %s1672_s10, 128, %s1678_s14, %s270_s13  }
  0x75   : > { %p1809_p0 = scmp.ne.s32.totalorder %s1803_s9, 0 }
  0x76   : > { %s1708_s15 = sand.u32 (!%p1809_p0), 1, %s1458_s25   ;;  %p1810_p9 = scmp.ne.s32.totalorder (!%p1809_p0), %s1800_s30, 0 }
  0x77   : > { %289 = sbr.rel (%p1809_p0) target bundleno = 830 (0x33e), region = 48  ;;  %s1021_s18 = sshll.u32 (!%p1809_p0), %s1708_s15, 3 }
  0x78   : > { %s292_s21 = scalar_lea.sflag (!%p1809_p0), [#allocation3], %s1708_s15  ;;  %s1714_s16 = scalar_lea.vmem (!%p1809_p0), [#allocation2], %s1021_s18 }
  0x7e   : > { %1437 = dma.done.wait (%p1810_p9), %s292_s21, 128  }
  0x7f   : > { %1439 = vsyncadd (%p1810_p9), %s292_s21, 4294967168  ;;  %p1811_p11 = scmp.eq.s32.totalorder %s1539_s28, 0 }
  0x81   : > { %1441 = dma.done.wait (%p1811_p11), [#allocation6], 5632   ;;  %p1812_p8 = pmov %p1811_p11 }
  0x83   : > { %1443 = vsyncadd (%p1812_p8), [#allocation6], 4294961664  ;;  %p1813_p13 = pmov %p1812_p8 }
  0x84   : > { %p1814_p6 = pmov %p1812_p8 }
  0x85   : > { %1445 = dma.done.wait (%p1813_p13), [#allocation9], 2048  }
  0x86   : > { %1447 = vsyncadd (%p1814_p6), [#allocation9], 4294965248  ;;  %v1476_v0 = vmov 0   ;;  %v1196_v1 = vld [vmem:[#allocation5 + $0x4] ss:$8 sps:$4 sm:$0xff]   ;;  %v339_v20 = vld [vmem:[%s1714_s16] sm:$0xff]  ;;  %v355_v59 = vlaneseq }
  0x87   : > { %461 = vmatprep.mubr.bf16.mxu0 %v1476_v0  ;;  %v1198_v2 = vld [vmem:[#allocation5] ss:$8 sps:$4 sm:$0xff]   ;;  %429 = vmatprep.subr.bf16.mxu0 %v1196_v1  ;;  %v1199_v3 = vld [vmem:[#allocation5 + $0x14] ss:$8 sps:$4 sm:$0xff]   ;;  %v1201_v4 = vld [vmem:[#allocation5 + $0x10] ss:$8 sps:$4 sm:$0xff]   ;;  %v340_v23 = vpack.c.bf16 %v339_v20, %v339_v20 }
  0x88   : > { %430 = vmatpush1.bf16.msra.mxu0 %v1198_v2  ;;  %v1202_v5 = vld [vmem:[#allocation5 + $0x24] ss:$8 sps:$4 sm:$0xff]   ;;  %v1204_v6 = vld [vmem:[#allocation5 + $0x20] ss:$8 sps:$4 sm:$0xff]   ;;  %v1205_v7 = vld [vmem:[#allocation5 + $0x34] ss:$8 sps:$4 sm:$0xff]  }
  0x89   : > { %431 = vmatprep.subr.bf16.mxu0 %v1199_v3  ;;  %v1214_v8 = vld [vmem:[#allocation7 + $0x4] ss:$8 sps:$4 sm:$0xff]   ;;  %v1216_v9 = vld [vmem:[#allocation7] ss:$8 sps:$4 sm:$0xff]   ;;  %v1207_v10 = vld [vmem:[#allocation5 + $0x30] ss:$8 sps:$4 sm:$0xff]  }
  0x8a   : > { %v1217_v11 = vld [vmem:[#allocation7 + $0x14] ss:$8 sps:$4 sm:$0xff]   ;;  %v1208_v12 = vld [vmem:[#allocation5 + $0x44] ss:$8 sps:$4 sm:$0xff]   ;;  %678 = vmatprep.subr.bf16.mxu1 %v1214_v8  ;;  %v1219_v13 = vld [vmem:[#allocation7 + $0x10] ss:$8 sps:$4 sm:$0xff]  }
  0x8b   : > { %679 = vmatpush1.bf16.msra.mxu1 %v1216_v9  ;;  %v1220_v14 = vld [vmem:[#allocation7 + $0x24] ss:$8 sps:$4 sm:$0xff]   ;;  %v1210_v15 = vld [vmem:[#allocation5 + $0x40] ss:$8 sps:$4 sm:$0xff]   ;;  %v1211_v16 = vld [vmem:[#allocation5 + $0x54] ss:$8 sps:$4 sm:$0xff]  }
  0x8c   : > { %432 = vmatpush1.bf16.msra.mxu0 %v1201_v4  ;;  %680 = vmatprep.subr.bf16.mxu1 %v1217_v11  ;;  %v1222_v17 = vld [vmem:[#allocation7 + $0x20] ss:$8 sps:$4 sm:$0xff]   ;;  %v1223_v18 = vld [vmem:[#allocation7 + $0x34] ss:$8 sps:$4 sm:$0xff]   ;;  %v1213_v19 = vld [vmem:[#allocation5 + $0x50] ss:$8 sps:$4 sm:$0xff]  }
  0x8d   : > { %433 = vmatprep.subr.bf16.mxu0 %v1202_v5  ;;  %v1225_v21 = vld [vmem:[#allocation7 + $0x30] ss:$8 sps:$4 sm:$0xff]   ;;  %v1226_v22 = vld [vmem:[#allocation7 + $0x44] ss:$8 sps:$4 sm:$0xff]   ;;  %vm425_vm0 = vcmask 785408   ;;  %v356_v60 = vshrl.u32 %v355_v59, 7 }
  0x8e   : > { %v1228_v24 = vld [vmem:[#allocation7 + $0x40] ss:$8 sps:$4 sm:$0xff]   ;;  %v1229_v25 = vld [vmem:[#allocation7 + $0x54] ss:$8 sps:$4 sm:$0xff]   ;;  %v1231_v26 = vld [vmem:[#allocation7 + $0x50] ss:$8 sps:$4 sm:$0xff]  }
  0x8f   : > { %681 = vmatpush1.bf16.msra.mxu1 %v1219_v13  ;;  %v1232_v27 = vld [vmem:[#allocation7 + $0x64] ss:$8 sps:$4 sm:$0xff]   ;;  %v1234_v28 = vld [vmem:[#allocation7 + $0x60] ss:$8 sps:$4 sm:$0xff]   ;;  %v1235_v29 = vld [vmem:[#allocation7 + $0x74] ss:$8 sps:$4 sm:$0xff]  }
  0x90   : > { %434 = vmatpush1.bf16.msra.mxu0 %v1204_v6  ;;  %682 = vmatprep.subr.bf16.mxu1 %v1220_v14  ;;  %v1237_v30 = vld [vmem:[#allocation7 + $0x70] ss:$8 sps:$4 sm:$0xff]   ;;  %v1238_v31 = vld [vmem:[#allocation7 + $0x84] ss:$8 sps:$4 sm:$0xff]   ;;  %v1240_v32 = vld [vmem:[#allocation7 + $0x80] ss:$8 sps:$4 sm:$0xff]  }
  0x91   : > { %435 = vmatprep.subr.bf16.mxu0 %v1205_v7  ;;  %v1241_v33 = vld [vmem:[#allocation7 + $0x94] ss:$8 sps:$4 sm:$0xff]   ;;  %v1243_v34 = vld [vmem:[#allocation7 + $0x90] ss:$8 sps:$4 sm:$0xff]   ;;  %v1244_v35 = vld [vmem:[#allocation7 + $0xa4] ss:$8 sps:$4 sm:$0xff]  }
  0x92   : > { %v1246_v36 = vld [vmem:[#allocation7 + $0xa0] ss:$8 sps:$4 sm:$0xff]   ;;  %v1247_v37 = vld [vmem:[#allocation7 + $0xb4] ss:$8 sps:$4 sm:$0xff]   ;;  %v1249_v38 = vld [vmem:[#allocation7 + $0xb0] ss:$8 sps:$4 sm:$0xff]  }
  0x93   : > { %683 = vmatpush1.bf16.msra.mxu1 %v1222_v17  ;;  %v1250_v39 = vld [vmem:[#allocation7 + $0xc4] ss:$8 sps:$4 sm:$0xff]   ;;  %v1252_v40 = vld [vmem:[#allocation7 + $0xc0] ss:$8 sps:$4 sm:$0xff]   ;;  %v1253_v41 = vld [vmem:[#allocation7 + $0xd4] ss:$8 sps:$4 sm:$0xff]  }
  0x94   : > { %436 = vmatpush1.bf16.msra.mxu0 %v1207_v10  ;;  %684 = vmatprep.subr.bf16.mxu1 %v1223_v18  ;;  %v1255_v42 = vld [vmem:[#allocation7 + $0xd0] ss:$8 sps:$4 sm:$0xff]   ;;  %v1256_v43 = vld [vmem:[#allocation7 + $0xe4] ss:$8 sps:$4 sm:$0xff]   ;;  %v1258_v44 = vld [vmem:[#allocation7 + $0xe0] ss:$8 sps:$4 sm:$0xff]  }
  0x95   : > { %437 = vmatprep.subr.bf16.mxu0 %v1208_v12  ;;  %v1259_v45 = vld [vmem:[#allocation7 + $0xf4] ss:$8 sps:$4 sm:$0xff]   ;;  %v1261_v46 = vld [vmem:[#allocation7 + $0xf0] ss:$8 sps:$4 sm:$0xff]   ;;  %v1262_v47 = vld [vmem:[#allocation8 + $0x40] sm:$0xff]   ;;  %v357_v61 = vsub.s32 0, %v356_v60 }
  0x96   : > { %v1263_v48 = vld [vmem:[#allocation8] sm:$0xff]   ;;  %v1264_v49 = vld [vmem:[#allocation8 + $0x48] sm:$0xff]   ;;  %v1266_v51 = vld [vmem:[#allocation8 + $0x50] sm:$0xff]   ;;  %v361_v63 = vsub.s32 1, %v356_v60  ;;  %s1089_s23 = sshll.u32 %s1539_s28, 7  ;;  %s337_s12 = scalar_lea.vmem [#allocation10], %s1021_s18 }
  0x97   : > { %685 = vmatpush1.bf16.msra.mxu1 %v1225_v21  ;;  %v1265_v50 = vld [vmem:[#allocation8 + $0x8] sm:$0xff]   ;;  %v1267_v52 = vld [vmem:[#allocation8 + $0x10] sm:$0xff]   ;;  %v1268_v53 = vld [vmem:[#allocation8 + $0x58] sm:$0xff]   ;;  %s913_s29 = sshll.u32 %s337_s12, 4  ;;  %s1744_s21 = scalar_lea.hbm %s1795_s7, %s1089_s23  ;;  %s1746_s29 = int_to_ptr.vmem [resolvable:$true] %s913_s29 }
  0x98   : > { %438 = vmatpush1.bf16.msra.mxu0 %v1210_v15  ;;  %686 = vmatprep.subr.bf16.mxu1 %v1226_v22  ;;  %v1269_v54 = vld [vmem:[#allocation8 + $0x18] sm:$0xff]   ;;  %v1270_v55 = vld [vmem:[#allocation8 + $0x60] sm:$0xff]   ;;  %v1272_v57 = vld [vmem:[#allocation8 + $0x68] sm:$0xff]   ;;  %s900_s16 = scalar_lea.sflag [#allocation4], %s1708_s15  ;;  %s1392_s28 = scalar_lea.vmem %s1746_s29, 128 }
  0x99   : > { %439 = vmatprep.subr.bf16.mxu0 %v1211_v16  ;;  %v1271_v56 = vld [vmem:[#allocation8 + $0x20] sm:$0xff]   ;;  %v1273_v58 = vld [vmem:[#allocation8 + $0x28] sm:$0xff]   ;;  %v353_v62 = vld [vmem:[%s1790_s2] sm:$0x3]  ;;  %p1393_p10 = scmp.ne.s32.totalorder %s1746_s29, %s1392_s28  ;;  %s1477_s18 = smov [#allocation10]  }
  0x9a   : > { %v358_v0 = vrot.slane %v353_v62, %v357_v61  ;;  %v362_v1 = vrot.slane %v353_v62, %v361_v63  ;;  %v1274_v12 = vld [vmem:[#allocation8 + $0x70] sm:$0xff]   ;;  %v1276_v14 = vld [vmem:[#allocation8 + $0x78] sm:$0xff]   ;;  %s1396_s30 = sshll.u32 %s1477_s18, 4  ;;  %s1397_s30 = int_to_ptr.vmem [resolvable:$false] %s1396_s30 }
  0x9b   : > { %687 = vmatpush1.bf16.msra.mxu1 %v1228_v24  ;;  %v1275_v13 = vld [vmem:[#allocation8 + $0x30] sm:$0xff]   ;;  %v1277_v15 = vld [vmem:[#allocation8 + $0x38] sm:$0xff]   ;;  %p1394_p3 = pnand %p1393_p10, %p1663_p5  ;;  %s1398_s9 = scalar_lea.vmem %s1397_s30, 256 }
  0x9c   : > { %440 = vmatpush1.bf16.msra.mxu0 %v1213_v19  ;;  %688 = vmatprep.subr.bf16.mxu1 %v1229_v25  ;;  %v506_v16 = vld [vmem:[%s1792_s4] sm:$0x3]  ;;  %p1399_p12 = scmp.lt.s32.totalorder %s1746_s29, %s1397_s30  ;;  %p1400_p2 = scmp.lt.s32.totalorder %s1398_s9, %s1392_s28 }
  0x9d   : > { %1092 = vmatprep.subr.bf16.mxu0 %v1262_v47  ;;  %v511_v17 = vrot.slane %v506_v16, %v357_v61  ;;  %v515_v18 = vrot.slane %v506_v16, %v361_v63  ;;  %p1395_p7 = pneg %p1394_p3 }
  0x9e   : > { %p1401_p1 = por %p1400_p2, %p1399_p12 }
  0x9f   : > { %1038 = vmatmul.mubr.msk.bf16.vlgmr.msra.gmra.mrb[0].mxu0 %vm425_vm0, %v340_v23  ;;  %689 = vmatpush1.bf16.msra.mxu1 %v1231_v26 }
  0xa0   : > { %690 = vmatprep.subr.bf16.mxu1 %v1232_v27  ;;  %1093 = vmatpush3.bf16.msra.mxu0 %v1263_v48  ;;  %p1402_p4 = pnand %p1401_p1, %p1395_p7 }
  0xa1   : > { %1094 = vmatprep.subr.bf16.mxu0 %v1264_v49 }
  0xa3   : > { %691 = vmatpush1.bf16.msra.mxu1 %v1234_v28 }
  0xa4   : > { %692 = vmatprep.subr.bf16.mxu1 %v1235_v29  ;;  %1095 = vmatpush3.bf16.msra.mxu0 %v1265_v50 }
  0xa5   : > { %1096 = vmatprep.subr.bf16.mxu0 %v1266_v51 }
  0xa7   : > { %693 = vmatpush1.bf16.msra.mxu1 %v1237_v30  ;;  %v1071_v30 = vld [vmem:[%s1794_s6] ss:$0 sm:$0xff] }
  0xa8   : > { %694 = vmatprep.subr.bf16.mxu1 %v1238_v31  ;;  %1097 = vmatpush3.bf16.msra.mxu0 %v1267_v52 }
  0xa9   : > { %1098 = vmatprep.subr.bf16.mxu0 %v1268_v53 }
  0xab   : > { %695 = vmatpush1.bf16.msra.mxu1 %v1240_v32 }
  0xac   : > { %696 = vmatprep.subr.bf16.mxu1 %v1241_v33  ;;  %1099 = vmatpush3.bf16.msra.mxu0 %v1269_v54 }
  0xad   : > { %1100 = vmatprep.subr.bf16.mxu0 %v1270_v55 }
  0xaf   : > { %697 = vmatpush1.bf16.msra.mxu1 %v1243_v34 }
  0xb0   : > { %698 = vmatprep.subr.bf16.mxu1 %v1244_v35  ;;  %1101 = vmatpush3.bf16.msra.mxu0 %v1271_v56 }
  0xb1   : > { %1102 = vmatprep.subr.bf16.mxu0 %v1272_v57 }
  0xb3   : > { %699 = vmatpush1.bf16.msra.mxu1 %v1246_v36 }
  0xb4   : > { %700 = vmatprep.subr.bf16.mxu1 %v1247_v37  ;;  %1103 = vmatpush3.bf16.msra.mxu0 %v1273_v58 }
  0xb5   : > { %1104 = vmatprep.subr.bf16.mxu0 %v1274_v12 }
  0xb7   : > { %701 = vmatpush1.bf16.msra.mxu1 %v1249_v38 }
  0xb8   : > { %702 = vmatprep.subr.bf16.mxu1 %v1250_v39  ;;  %1105 = vmatpush3.bf16.msra.mxu0 %v1275_v13 }
  0xb9   : > { %1106 = vmatprep.subr.bf16.mxu0 %v1276_v14 }
  0xbb   : > { %703 = vmatpush1.bf16.msra.mxu1 %v1252_v40 }
  0xbc   : > { %704 = vmatprep.subr.bf16.mxu1 %v1253_v41  ;;  %1107 = vmatpush3.bf16.msra.mxu0 %v1277_v15 }
  0xbf   : > { %705 = vmatpush1.bf16.msra.mxu1 %v1255_v42 }
  0xc0   : > { %706 = vmatprep.subr.bf16.mxu1 %v1256_v43 }
  0xc3   : > { %707 = vmatpush1.bf16.msra.mxu1 %v1258_v44 }
  0xc4   : > { %708 = vmatprep.subr.bf16.mxu1 %v1259_v45 }
  0xc7   : > { %709 = vmatpush1.bf16.msra.mxu1 %v1261_v46 }
 0x172   : > { %v463_v2 = vpop.f32.mrb[0].mxu0 }
 0x173   : > { %v464_v3 = vadd.f32 %v463_v2, %v358_v0  ;;  %v465_v4 = vpop.f32.mrb[1].mxu0 }
 0x174   : > { %v466_v5 = vadd.f32 %v465_v4, %v362_v1  ;;  %v467_v6 = vpop.f32.mrb[2].mxu0 }
 0x175   : > { %v470_v7 = vmax.f32 %v464_v3, 0.0  ;;  %v468_v8 = vpop.f32.mrb[3].mxu0 }
 0x176   : > { %v471_v9 = vmax.f32 %v466_v5, 0.0 }
 0x177   : > { %v472_v11 = vpack.c.bf16 %v470_v7, %v470_v7 }
 0x178   : > { %v473_v10 = vpack.c.bf16 %v471_v9, %v471_v9 }
 0x17a   : > { %710 = vmatprep.mubr.bf16.mxu1 %v473_v10 }
 0x17b   : > { %711 = vmatmul.mubr.bf16.vlgmr.msra.gmra.mrb[0].mxu1 %v472_v11 }
 0x24e   : > { %v712_v19 = vpop.f32.mrb[0].mxu1 }
 0x24f   : > { %v713_v20 = vadd.f32 %v712_v19, %v511_v17  ;;  %v714_v21 = vpop.f32.mrb[1].mxu1 }
 0x250   : > { %v715_v22 = vadd.f32 %v714_v21, %v515_v18  ;;  %v716_v23 = vpop.f32.mrb[2].mxu1 }
 0x251   : > { %v719_v24 = vmax.f32 %v713_v20, 0.0  ;;  %v717_v25 = vpop.f32.mrb[3].mxu1 }
 0x252   : > { %v720_v26 = vmax.f32 %v715_v22, 0.0 }
 0x253   : > { %v721_v28 = vpack.c.bf16 %v719_v24, %v719_v24 }
 0x254   : > { %v722_v27 = vpack.c.bf16 %v720_v26, %v720_v26 }
 0x256   : > { %890 = vmatprep.mubr.bf16.mxu0 %v722_v27 }
 0x257   : > { %891 = vmatmul.mubr.bf16.vlgmr.msra.gmra.mrb[4].mxu0 %v721_v28 }
 0x32a   : > { %v1108_v29 = vpop.f32.mrb[4].mxu0 }
 0x32b   : > { %v1109_v31 = vpop.f32.mrb[5].mxu0 }
 0x32c   : > { %v1110_v32 = vadd.f32 %v1109_v31, %v1108_v29  ;;  %v1111_v33 = vpop.f32.mrb[6].mxu0 }
 0x32d   : > { %v1112_v34 = vpop.f32.mrb[7].mxu0 }
 0x32e   : > { %v893_v35 = vadd.f32 %v1110_v32, %v1071_v30 }
 0x330   : > { %898 = vst [vmem:[%s337_s12] sm:$0xff] %v893_v35 }
 0x331   : > { %1405 = shalt.err (!%p1402_p4)
}
 0x332   : > { %s1406_s15 = scalar_lea.hbm %s1744_s21, 128  ;;  %s1410_s22 = scalar_lea.hbm %s1795_s7, 256 }
 0x333   : > { %p1407_p0 = scmp.ne.s32.totalorder %s1744_s21, %s1406_s15  ;;  %p1411_p8 = scmp.lt.u32.totalorder %s1744_s21, %s1795_s7 }
 0x334   : > { %p1412_p13 = scmp.lt.u32.totalorder %s1410_s22, %s1406_s15  ;;  %p1414_p10 = scmp.lt.u32.totalorder %s1406_s15, %s1744_s21 }
 0x335   : > { %p1408_p9 = pnand %p1407_p0, %p1663_p5 }
 0x336   : > { %p1413_p6 = por %p1412_p13, %p1411_p8 }
 0x337   : > { %p1409_p11 = pneg %p1408_p9 }
 0x338   : > { %p1415_p3 = por %p1414_p10, %p1413_p6 }
 0x33a   : > { %p1416_p7 = pnand %p1415_p3, %p1409_p11 }
 0x33c   : > { %1419 = shalt.err (!%p1416_p7)
}
 0x33d   : > { %1128 = dma.vmem_to_hbm [thread:$0]  (%p1663_p5), %s1746_s29, 128, %s1744_s21, %s900_s16  }
 0x33e PF: > { %s1815_s12 = sld [smem:[#allocation15_spill]]  ;;  %s925_s11 = sand.u32 1, %s1454_s24  }
 0x33f   : > { %p1817_p2 = scmp.ge.s32.totalorder %s1466_s27, 2  ;;  %s926_s17 = scalar_lea.sflag [#allocation4], %s925_s11 }
 0x344   : > { %p1816_p12 = scmp.ne.s32.totalorder %s1815_s12, 0 }
 0x346   : > { %p1145_p1 = pnand %p1817_p2, %p1816_p12 }
 0x348   : > { %1449 = dma.done.wait (!%p1145_p1), %s926_s17, 128  }
 0x349   : > { %1451 = vsyncadd (!%p1145_p1), %s926_s17, 4294967168  ;;  %p22_p4 = scmp.ge.s32.totalorder %s1649_s8, 4   ;;  %s1818_s24 = smov %s1458_s25 }
 0x34a   : > { %s1819_s25 = smov %s1462_s26  ;;  %s1820_s26 = smov %s1659_s19 }
 0x34b   : > { %s1821_s27 = smov %s1649_s8  ;;  %24 = sbr.rel (!%p22_p4) target bundleno = 7 (0x7), region = 105 }
 0x352   :  { %931 = vsyncpa [#allocation3], 1 }
 0x353   :  { %933 = vsyncpa [#allocation3 + $0x1], 1 }
 0x354   :  { %934 = vsyncpa [#allocation6], 1 }
 0x355   :  { %935 = vsyncpa [#allocation9], 1 }
 0x356   :  { %936 = vsyncpa [#allocation4], 1 }
 0x357   :  { %938 = vsyncpa [#allocation4 + $0x1], 1 }

</bundles_post_ra>
